<compile_context>
chip_gen: v6e
topology: v6e:2x2x1
jax: 0.10.0
libtpu: 0.0.40
codegen_flags: <defaults>
</compile_context>

<pallas_src>
from functools import partial

import jax
import jax.numpy as jnp
from jax.experimental import pallas as pl
from jax.experimental.pallas import tpu as pltpu

FEATURE_SIZE = 8
HIDDEN_SIZE = 32
LAG = 4
N_CHANNELS = [1, 5, 5, 1]
KERNEL_SIZE = [3, 3, 3]
DILATION = 1  # padding='same', dilation=1 -> symmetric zero pad of (k-1)//2

# The conv-stack fold below is exact ONLY because CausalCNNModel applies no
# nonlinearity between its Conv1d layers.  If an activation is ever inserted
# between convs, this must be set to False (and the fold replaced).
_CONV_STACK_HAS_NO_ACTIVATION = True


# ----------------------------------------------------------------------------
# Pallas kernel: one batch tile per grid step, batch on the lane axis.
# ----------------------------------------------------------------------------
def causal_cnn_kernel(in_ref, w_in_ref, b_in_ref, wf_ref, bf_ref, out_ref):
    # in_ref:   (L+F, B_TILE) bf16  -- fused [x ; ext] stream
    # w_in_ref: (H, L+F) f32        -- conv stack + Linear1 folded, x|ext fused
    # b_in_ref: (H, 1)   wf_ref: (1, H)   bf_ref: (1, 1)
    xin = in_ref[...].astype(jnp.float32)                          # bf16 -> f32
    hid = (jnp.dot(w_in_ref[...], xin, preferred_element_type=jnp.float32)
           + b_in_ref[...])                                        # (H, B_TILE)
    hid = jnp.maximum(hid, 0.0)                                    # ReLU
    out_ref[...] = (jnp.dot(wf_ref[...], hid,
                            preferred_element_type=jnp.float32)
                    + bf_ref[...])                                 # (1, B_TILE) lane-dense


# ----------------------------------------------------------------------------
# Plain-JAX helpers (trace-time glue + numerical reference).
# ----------------------------------------------------------------------------
def _conv1d_same_ref(x, w, b):
    """x: (C_in, L), w: (C_out, C_in, K) [PyTorch layout], b: (C_out,)."""
    cin, L = x.shape
    cout, _, k = w.shape
    pad_l = (k - 1) // 2
    pad_r = k - 1 - pad_l
    xp = jnp.pad(x, ((0, 0), (pad_l, pad_r)))
    out = jnp.zeros((cout, L), jnp.float32)
    for kk in range(k):
        out = out + jnp.einsum('oi,il->ol', w[:, :, kk], xp[:, kk:kk + L])
    return out + b[:, None]


def _conv_stack_ref(x_row, params):
    """Apply the 3 'same'-padded convs to a single (LAG,) series -> (LAG,)."""
    h = x_row.reshape(N_CHANNELS[0], LAG)
    for i in range(len(KERNEL_SIZE)):
        h = _conv1d_same_ref(h, params[f"conv_w{i}"], params[f"conv_b{i}"])
    return h.reshape(LAG)  # C_out of last conv is 1


def _forward_ref(x_row, ext_row, params):
    """Plain-JAX replica of the PyTorch forward for one sample (correctness ref)."""
    h3 = _conv_stack_ref(x_row, params)
    flat = jnp.concatenate([h3, ext_row.reshape(-1)])
    hid = jnp.maximum(params["wl"] @ flat + params["bl"], 0.0)
    pred = params["wf"] @ hid + params["bf"].reshape(-1)
    return pred[0]


def fold_params(params):
    """Fold the activation-free conv stack (affine: h3 = A@x + c) into Linear 1."""
    assert _CONV_STACK_HAS_NO_ACTIVATION, (
        "fold_params is only valid while the conv stack has no nonlinearities")
    L = LAG
    zero = jnp.zeros((L,), jnp.float32)
    c = _conv_stack_ref(zero, params)                                  # (L,)
    basis = jax.vmap(lambda e: _conv_stack_ref(e, params))(
        jnp.eye(L, dtype=jnp.float32))                                 # rows = A[:,i]+c
    A = (basis - c).T                                                  # (L, L)
    wl, bl = params["wl"], params["bl"]                                # (H, L+F), (H,)
    wl_x, wl_e = wl[:, :L], wl[:, L:]
    return {
        "W_in": jnp.concatenate([wl_x @ A, wl_e], axis=1),  # (H, L+F) fused weight
        "b_in": (bl + wl_x @ c).reshape(-1, 1),             # (H, 1)
        "wf": params["wf"],                                  # (1, H)
        "bf": params["bf"],                                  # (1, 1)
    }


def init_params(key):
    """Deterministic PyTorch-style uniform(-1/sqrt(fan_in), 1/sqrt(fan_in)) init."""
    keys = iter(jax.random.split(key, 16))

    def u(shape, fan_in):
        bound = 1.0 / (fan_in ** 0.5)
        return jax.random.uniform(next(keys), shape, jnp.float32, -bound, bound)

    p = {}
    for i in range(len(N_CHANNELS) - 1):
        cin, cout, k = N_CHANNELS[i], N_CHANNELS[i + 1], KERNEL_SIZE[i]
        fan = cin * k
        p[f"conv_w{i}"] = u((cout, cin, k), fan)   # PyTorch Conv1d weight layout
        p[f"conv_b{i}"] = u((cout,), fan)
    in_dim = LAG * N_CHANNELS[-1] + FEATURE_SIZE
    p["wl"] = u((HIDDEN_SIZE, in_dim), in_dim)     # (H, L+F)
    p["bl"] = u((HIDDEN_SIZE,), in_dim)            # (H,)
    p["wf"] = u((1, HIDDEN_SIZE), HIDDEN_SIZE)     # (1, H)
    p["bf"] = u((1, 1), HIDDEN_SIZE)               # (1, 1)
    return p


# ----------------------------------------------------------------------------
# Batched forward: one pallas_call over a grid of batch tiles.
# ----------------------------------------------------------------------------
def _select_b_tile(B, target_b_tile):
    """Lane-multiple tile, capped so the grid has >=2 steps (v7x megacore)."""
    target = max(128, (int(target_b_tile) // 128) * 128)
    half = -(-B // 2)                 # cdiv(B, 2)
    half = -(-half // 128) * 128      # round up to a lane multiple
    return max(128, min(target, half))


@partial(jax.jit, static_argnames=("target_b_tile",))
def _causal_cnn_forward_impl(x, ext_data, params, *, target_b_tile=65536):
    B = x.shape[0]
    L, F, H = LAG, FEATURE_SIZE, HIDDEN_SIZE
    K = L + F

    folded = fold_params(params)      # trace-time conv fold (tiny; fuses under jit)

    b_tile = _select_b_tile(B, target_b_tile)
    b_pad = pl.cdiv(B, b_tile) * b_tile

    # Fused bf16 input stream, batch on the lane axis.  Under jit the
    # reshape+concat+cast+pad+transpose fuse into a single pass.
    x2 = x.reshape(B, L).astype(jnp.float32)
    e2 = ext_data.reshape(B, F).astype(jnp.float32)
    fused = jnp.concatenate([x2, e2], axis=1).astype(jnp.bfloat16)   # (B, K)
    if b_pad != B:
        fused = jnp.pad(fused, ((0, b_pad - B), (0, 0)))
    fused_t = fused.T                                                # (K, b_pad)

    batch_map = lambda b: (0, b)
    const_map = lambda b: (0, 0)      # weights stay VMEM-resident across the grid

    flops = 2 * H * K * b_pad + 2 * H * b_pad
    bytes_accessed = K * b_pad * 2 + b_pad * 4 + (H * K + H + H + 1) * 4

    out = pl.pallas_call(
        causal_cnn_kernel,
        out_shape=jax.ShapeDtypeStruct((1, b_pad), jnp.float32),
        grid_spec=pltpu.PrefetchScalarGridSpec(
            num_scalar_prefetch=0,
            grid=(b_pad // b_tile,),
            in_specs=[
                pl.BlockSpec((K, b_tile), batch_map),   # fused [x ; ext] (streamed bf16)
                pl.BlockSpec((H, K), const_map),        # W_in (resident)
                pl.BlockSpec((H, 1), const_map),        # b_in (resident)
                pl.BlockSpec((1, H), const_map),        # wf (resident)
                pl.BlockSpec((1, 1), const_map),        # bf (resident)
            ],
            out_specs=pl.BlockSpec((1, b_tile), batch_map),  # lane-dense output
        ),
        compiler_params=pltpu.CompilerParams(
            dimension_semantics=("parallel",),           # megacore sharding on v7x
            vmem_limit_bytes=48 * 1024 * 1024),          # safe on v5e/v6e/v7x
        cost_estimate=pl.CostEstimate(
            flops=int(flops), transcendentals=0,
            bytes_accessed=int(bytes_accessed)),
    )(fused_t, folded["W_in"], folded["b_in"], folded["wf"], folded["bf"])

    return out.reshape(b_pad)[:B]     # one scalar prediction per sample


def causal_cnn_forward(x, ext_data, lengths, params, *, target_b_tile=65536):
    """x: (B, 1, LAG) (or (B, LAG)), ext_data: (B, FEATURE_SIZE) -> (B,) preds.

    `lengths` is unused, exactly as in the PyTorch forward.
    `target_b_tile`: desired batch-tile (lane) width; auto-capped so the grid has
    at least 2 steps and VMEM stays within budget on all generations.
    """
    del lengths
    return _causal_cnn_forward_impl(x, ext_data, params,
                                    target_b_tile=target_b_tile)


if __name__ == "__main__":
    key = jax.random.PRNGKey(0)
    k_x, k_ext, k_p = jax.random.split(key, 3)

    # Small batched inputs (each sample is the PyTorch forward's (C_in=1, L=lag)).
    # B=384 exercises the >=2-step tile cap, multi-tile grid and the pad-to-tile path.
    B = 384
    x = jax.random.normal(k_x, (B, N_CHANNELS[0], LAG), jnp.float32)
    ext_data = jax.random.normal(k_ext, (B, FEATURE_SIZE), jnp.float32)
    lengths = jnp.full((B,), LAG, jnp.int32)   # unused (matches reference forward)

    params = init_params(k_p)

    pred = causal_cnn_forward(x, ext_data, lengths, params)
    pred = jax.block_until_ready(pred)
    assert pred.shape == (B,)

    # Correctness check: plain-JAX replica of the PyTorch forward, evaluated on the
    # same bf16-quantized inputs the kernel streams (all other math is f32).
    x_q = x.astype(jnp.bfloat16).astype(jnp.float32)
    e_q = ext_data.astype(jnp.bfloat16).astype(jnp.float32)
    ref = jax.vmap(lambda xr, er: _forward_ref(xr.reshape(LAG), er, params))(x_q, e_q)
    err = float(jnp.max(jnp.abs(pred - ref)))
    if err > 1e-3:
        raise AssertionError(f"kernel/reference mismatch: max abs err = {err}")

    print("KERNEL_OK")
</pallas_src>

<mosaic_0001>
module attributes {stable_mosaic.version = 11 : i64} {
  func.func @causal_cnn_kernel(%arg0: i32, %arg1: memref<12x256xbf16, #tpu.memory_space<vmem>>, %arg2: memref<32x12xf32, #tpu.memory_space<vmem>>, %arg3: memref<32x1xf32, #tpu.memory_space<vmem>>, %arg4: memref<1x32xf32, #tpu.memory_space<vmem>>, %arg5: memref<1x1xf32, #tpu.memory_space<vmem>>, %arg6: memref<1x256xf32, #tpu.memory_space<vmem>>) attributes {dimension_semantics = [#tpu.dimension_semantics<parallel>], iteration_bounds = array<i64: 2>, scalar_prefetch = 0 : i64, scratch_operands = 0 : i64, tpu.core_type = #tpu.core_type<tc>, window_params = [{transform_indices = @transform_0, window_bounds = array<i64: 12, 256>}, {pipeline_mode = #tpu.pipeline_mode<synchronous>, transform_indices = @transform_1, window_bounds = array<i64: 32, 12>}, {pipeline_mode = #tpu.pipeline_mode<synchronous>, transform_indices = @transform_2, window_bounds = array<i64: 32, 1>}, {pipeline_mode = #tpu.pipeline_mode<synchronous>, transform_indices = @transform_3, window_bounds = array<i64: 1, 32>}, {pipeline_mode = #tpu.pipeline_mode<synchronous>, transform_indices = @transform_4, window_bounds = array<i64: 1, 1>}, {transform_indices = @transform_5, window_bounds = array<i64: 1, 256>}]} {
    %c0 = arith.constant 0 : index
    %c0_0 = arith.constant 0 : index
    %0 = vector.load %arg1[%c0, %c0_0] : memref<12x256xbf16, #tpu.memory_space<vmem>>, vector<12x256xbf16>
    %1 = arith.extf %0 : vector<12x256xbf16> to vector<12x256xf32>
    %c0_1 = arith.constant 0 : index
    %c0_2 = arith.constant 0 : index
    %2 = vector.load %arg2[%c0_1, %c0_2] : memref<32x12xf32, #tpu.memory_space<vmem>>, vector<32x12xf32>
    %cst = arith.constant dense<0.000000e+00> : vector<32x256xf32>
    %3 = tpu.matmul %2, %1, %cst {dimension_numbers = #tpu.dot_dimension_numbers<[1], [0], [0], [1], [0, 0, 1, 1], [], []>} : vector<32x12xf32>, vector<12x256xf32>, vector<32x256xf32> -> vector<32x256xf32>
    %c0_3 = arith.constant 0 : index
    %c0_4 = arith.constant 0 : index
    %4 = vector.load %arg3[%c0_3, %c0_4] : memref<32x1xf32, #tpu.memory_space<vmem>>, vector<32x1xf32>
    %5 = vector.broadcast %4 : vector<32x1xf32> to vector<32x256xf32>
    %6 = arith.addf %3, %5 : vector<32x256xf32>
    %cst_5 = arith.constant 0.000000e+00 : f32
    %7 = vector.broadcast %cst_5 : f32 to vector<32x256xf32>
    %8 = arith.maximumf %6, %7 : vector<32x256xf32>
    %c0_6 = arith.constant 0 : index
    %c0_7 = arith.constant 0 : index
    %9 = vector.load %arg4[%c0_6, %c0_7] : memref<1x32xf32, #tpu.memory_space<vmem>>, vector<1x32xf32>
    %cst_8 = arith.constant dense<0.000000e+00> : vector<1x256xf32>
    %10 = tpu.matmul %9, %8, %cst_8 {dimension_numbers = #tpu.dot_dimension_numbers<[1], [0], [0], [1], [0, 0, 1, 1], [], []>} : vector<1x32xf32>, vector<32x256xf32>, vector<1x256xf32> -> vector<1x256xf32>
    %c0_9 = arith.constant 0 : index
    %c0_10 = arith.constant 0 : index
    %11 = vector.load %arg5[%c0_9, %c0_10] : memref<1x1xf32, #tpu.memory_space<vmem>>, vector<1x1xf32>
    %12 = vector.broadcast %11 : vector<1x1xf32> to vector<1x256xf32>
    %13 = arith.addf %10, %12 : vector<1x256xf32>
    %c0_11 = arith.constant 0 : index
    %c0_12 = arith.constant 0 : index
    %14 = vector.load %arg6[%c0_11, %c0_12] : memref<1x256xf32, #tpu.memory_space<vmem>>, vector<1x256xf32>
    tpu.vector_store %arg6[%c0_11, %c0_12], %13 {strides = array<i32>} : memref<1x256xf32, #tpu.memory_space<vmem>>, vector<1x256xf32>,
    return
  }
  func.func @transform_0(%arg0: i32) -> (i32, i32) {
    %c0_i32 = arith.constant 0 : i32
    %c0_i32_0 = arith.constant 0 : i32
    return %c0_i32, %arg0 : i32, i32
  }
  func.func @transform_1(%arg0: i32) -> (i32, i32) {
    %c0_i32 = arith.constant 0 : i32
    %c0_i32_0 = arith.constant 0 : i32
    %c0_i32_1 = arith.constant 0 : i32
    return %c0_i32, %c0_i32_0 : i32, i32
  }
  func.func @transform_2(%arg0: i32) -> (i32, i32) {
    %c0_i32 = arith.constant 0 : i32
    %c0_i32_0 = arith.constant 0 : i32
    %c0_i32_1 = arith.constant 0 : i32
    return %c0_i32, %c0_i32_0 : i32, i32
  }
  func.func @transform_3(%arg0: i32) -> (i32, i32) {
    %c0_i32 = arith.constant 0 : i32
    %c0_i32_0 = arith.constant 0 : i32
    %c0_i32_1 = arith.constant 0 : i32
    return %c0_i32, %c0_i32_0 : i32, i32
  }
  func.func @transform_4(%arg0: i32) -> (i32, i32) {
    %c0_i32 = arith.constant 0 : i32
    %c0_i32_0 = arith.constant 0 : i32
    %c0_i32_1 = arith.constant 0 : i32
    return %c0_i32, %c0_i32_0 : i32, i32
  }
  func.func @transform_5(%arg0: i32) -> (i32, i32) {
    %c0_i32 = arith.constant 0 : i32
    %c0_i32_0 = arith.constant 0 : i32
    return %c0_i32, %arg0 : i32, i32
  }
}

</mosaic_0001>

<bundles_post_ra>
// kernel: _causal_cnn_forward_impl.1
= control target key start
LH: loop header
LB: loop body
LE: loop exit
PB: predicated region body
PF: predicated region fallthrough
CT: control target
= control target key end

     0   :  { %s775_s0 = inlined_call_operand.vmem [shape: bf16[12,512], index: 0, kind: input, shape index: {}]   ;;  %s776_s1 = inlined_call_operand.vmem [shape: f32[32,12], index: 1, kind: input, shape index: {}]   ;;  %s777_s2 = inlined_call_operand.vmem [shape: f32[32,1], index: 2, kind: input, shape index: {}]   ;;  %s778_s3 = inlined_call_operand.vmem [shape: f32[1,32], index: 3, kind: input, shape index: {}]   ;;  %s779_s4 = inlined_call_operand.<no memory space> [shape: f32[1,1], index: 4, kind: input, shape index: {}]   ;;  %s780_s5 = inlined_call_operand.vmem [shape: f32[1,512], index: 5, kind: output, shape index: {}]  }
   0x1   :  { %v10_v0 = vstv %s779_s4 }
   0x2   :  { %11 = vst [vmem:[#allocation2] sm:$0x1] %v10_v0 }
   0x3   :  { %s692_s20 = smov 0   ;;  %s694_s21 = smov 0  }
   0x4   :  { %s696_s22 = smov 0  }
   0x5 LB: > { %s583_s4 = sadd.s32 4294967295, %s654_s22   ;;  %s709_s23 = sadd.s32 1, %s654_s22   ;;  %s654_s22 = sphi %s696_s22, %s783_s22   ;;  %s650_s21 = sphi %s694_s21, %s782_s21   ;;  %s646_s20 = sphi %s692_s20, %s781_s20  }
   0x6   : > { %s21_s24 = ssub.s32 %s654_s22, %s709_s23  ;;  %s24_s25 = sadd.s32 1, %s650_s21 }
   0x7   : > { %p22_p0 = scmp.eq.s32.totalorder %s21_s24, 0  ;;  %p31_p1 = scmp.ne.s32.totalorder %s650_s21, %s646_s20 }
   0x8   : > { %p32_p2 = scmp.eq.s32.totalorder %s654_s22, 0  ;;  %p586_p4 = scmp.ge.s32.totalorder %s654_s22, 2 }
   0x9   : > { %s718_s26 = scalar_select %p22_p0, %s650_s21, %s24_s25  }
   0xa   : > { %p33_p3 = por %p32_p2, %p31_p1  ;;  %179 = sbr.rel (%p586_p4) target bundleno = 20 (0x14), region = 32 }
   0xf   : > { %182 = sbr.rel (!%p33_p3) target bundleno = 20 (0x14), region = 36  ;;  %s184_s27 = sand.u32 (%p33_p3), 1, %s650_s21  }
  0x10   : > { %s602_s28 = sshll.u32 (%p33_p3), %s654_s22, 3  ;;  %s587_s29 = sshll.u32 (%p33_p3), %s184_s27, 4 }
  0x11   : > { %s189_s7 = scalar_lea.vmem (%p33_p3), %s775_s0, %s602_s28  ;;  %s186_s8 = scalar_lea.vmem (%p33_p3), [#allocation3], %s587_s29 }
  0x12   : > { %v220_v1 = vld [vmem:[%s189_s7] sm:$0xff] (%p33_p3)  ;;  %v222_v2 = vld [vmem:[%s189_s7 + $0x10] sm:$0xff] (%p33_p3) }
  0x13   : > { %221 = vst [vmem:[%s186_s8] sm:$0xff] (%p33_p3), %v220_v1  ;;  %223 = vst [vmem:[%s186_s8 + $0x8] sm:$0xff] (%p33_p3), %v222_v2 }
  0x14 PF: > { %p590_p5 = scmp.ge.s32.totalorder %s654_s22, 1  ;;  %p228_p6 = scmp.lt.s32.totalorder %s654_s22, 3 }
  0x16   : > { %p229_p7 = pnand %p590_p5, %p228_p6 }
  0x17   : > { %s235_s9 = sand.u32 (!%p229_p7), 1, %s646_s20  }
  0x18   : > { %232 = sbr.rel (%p229_p7) target bundleno = 461 (0x1cd), region = 74  ;;  %s591_s10 = sshll.u32 (!%p229_p7), %s235_s9, 4 }
  0x19   : > { %s237_s15 = scalar_lea.vmem (!%p229_p7), [#allocation3], %s591_s10  ;;  %s592_s9 = sshll.u32 (!%p229_p7), %s583_s4, 1 }
  0x1a   : > { %p263_p8 = scmp.lt.s32.totalorder (!%p229_p7), %s592_s9, 3 }
  0x1d   : > { %v656_v3 = vmov 0.0   ;;  %v278_v4 = vld [vmem:[%s777_s2 + $0x8] sm:$0xff]  ;;  %v657_v5 = vmov 0   ;;  %v280_v6 = vld [vmem:[%s777_s2 + $0x18] sm:$0xff]  ;;  %vm314_vm0 = vcmask 1043456   ;;  %v277_v12 = vld [vmem:[%s777_s2] sm:$0xff]  ;;  %v425_v49 = vlaneseq }
  0x1e   : > { %385 = vmatprep.mubr.f32.mxu0 %v656_v3  ;;  %497 = vmatprep.mubr.f32.mxu1 %v656_v3  ;;  %v267_v7 = vld [vmem:[%s237_s15] sm:$0xff]  ;;  %v268_v8 = vld [vmem:[%s237_s15 + $0x8] sm:$0x33]  ;;  %vm301_vm1 = vcmask 97280   ;;  %v419_v16 = vld [vmem:[#allocation2] sm:$0x1] }
  0x1f   : > { %631 = vset.pattern.permute.xlu1 %v657_v5  ;;  %630 = vset.pattern.permute.xlu0 %v657_v5  ;;  %v271_v9 = vunpack.c.l.bf16 %v268_v8  ;;  %v272_v10 = vunpack.c.h.bf16 %v268_v8  ;;  %v270_v11 = vunpack.c.h.bf16 %v267_v7  ;;  %v269_v13 = vunpack.c.l.bf16 %v267_v7  ;;  %v279_v14 = vld [vmem:[%s777_s2 + $0x10] sm:$0xff]  ;;  %v273_v15 = vld [vmem:[%s776_s1] sm:$0xff]  ;;  %v274_v17 = vld [vmem:[%s776_s1 + $0x8] sm:$0xff]  ;;  %s785_s9 = smov (!%p263_p8, %s592_s9), 3 }
  0x20   : > { %288 = vperm.xlu1 %631, %v278_v4   ;;  %298 = vperm.xlu0 %630, %v280_v6   ;;  %v275_v18 = vld [vmem:[%s776_s1 + $0x10] sm:$0xff]  ;;  %v276_v19 = vld [vmem:[%s776_s1 + $0x18] sm:$0xff]  ;;  %v418_v48 = vld [vmem:[%s778_s3] sm:$0x1]  ;;  %vm429_vm2 = vcmask 261120   ;;  %v426_v50 = vshrl.u32 %v425_v49, 7  ;;  %s265_s12 = scalar_lea.vmem %s780_s5, %s785_s9 }
  0x21   : > { %593 = vmatprep.subr.msk.mxu0 %vm314_vm0, %v272_v10  ;;  %v658_v51 = vmov 1966171168   ;;  %vm524_vm3 = vcmp.lt.s32.totalorder %v425_v49, 256 }
  0x22   : > { %594 = vmatpush1.msk.msra.mxu0 %vm314_vm0, %v271_v9  ;;  %v508_v52 = vunpack.c.l.s4 %v658_v51  ;;  %v427_v53 = vsub.s32 0, %v426_v50 }
  0x23   : > { %351 = vmatprep.subr.mxu0 %v270_v11 }
  0x24   : > { %283 = vperm.xlu1 %631, %v277_v12   ;;  %293 = vperm.xlu0 %630, %v279_v14   ;;  %v509_v55 = vunpack.c.0.s8 %v508_v52 }
  0x25   : > { %352 = vmatpush1.msra.mxu0 %v269_v13 }
  0x26   : > { %595 = vmatmul.mubr.msk.f32.vlgmr.msra.gmra.mxu0 %vm301_vm1, %v273_v15  ;;  %v512_v61 = vsub.s32 %v509_v55, %v426_v50 }
  0x27   : > { %391 = vmatprep.mubr.f32.mxu0 %v656_v3 }
  0x28   : > { %422 = vperm.xlu0 %630, %v419_v16  }
  0x2a   : > { %596 = vmatmul.mubr.msk.f32.gmra.mxu0 %vm301_vm1, %v274_v17 }
  0x2b   : > { %397 = vmatprep.mubr.f32.mxu0 %v656_v3 }
  0x2e   : > { %597 = vmatmul.mubr.msk.f32.gmra.mxu0 %vm301_vm1, %v275_v18 }
  0x2f   : > { %403 = vmatprep.mubr.f32.mxu0 %v656_v3 }
  0x32   : > { %598 = vmatmul.mubr.msk.f32.gmra.mxu0 %vm301_vm1, %v276_v19 }
  0x9b   : > { %v299_v24 = vpop.permute.xlu0 %298  ;;  %v289_v27 = vpop.permute.xlu1 %288 }
  0x9f   : > { %v294_v29 = vpop.permute.xlu0 %293  ;;  %v284_v35 = vpop.permute.xlu1 %283 }
  0xa3   : > { %v423_v54 = vpop.permute.xlu0 %422 }
  0xa4   : > { %v428_v57 = vrot.slane %v423_v54, %v427_v53 }
  0xe6   : > { %v387_v20 = vpop.f32.mrf.mxu0 }
  0xe7   : > { %v388_v42 = vadd.f32 %v387_v20, %v284_v35 }
  0xe8   : > { %v389_v21 = vpop.f32.mrf.mxu0 }
  0xe9   : > { %v390_v40 = vadd.f32 %v389_v21, %v284_v35  ;;  %v410_v47 = vmax.f32 %v388_v42, 0.0 }
  0xea   : > { %v393_v22 = vpop.f32.mrf.mxu0 }
  0xeb   : > { %v394_v38 = vadd.f32 %v393_v22, %v289_v27  ;;  %v411_v46 = vmax.f32 %v390_v40, 0.0 }
  0xec   : > { %v395_v23 = vpop.f32.mrf.mxu0 }
  0xed   : > { %v396_v36 = vadd.f32 %v395_v23, %v289_v27  ;;  %v412_v45 = vmax.f32 %v394_v38, 0.0 }
  0xee   : > { %v399_v25 = vpop.f32.mrf.mxu0 }
  0xef   : > { %v400_v34 = vadd.f32 %v399_v25, %v294_v29  ;;  %v413_v44 = vmax.f32 %v396_v36, 0.0 }
  0xf0   : > { %v401_v26 = vpop.f32.mrf.mxu0 }
  0xf1   : > { %v402_v32 = vadd.f32 %v401_v26, %v294_v29  ;;  %v414_v43 = vmax.f32 %v400_v34, 0.0 }
  0xf2   : > { %v405_v28 = vpop.f32.mrf.mxu0 }
  0xf3   : > { %v406_v30 = vadd.f32 %v405_v28, %v299_v24  ;;  %v415_v41 = vmax.f32 %v402_v32, 0.0 }
  0xf4   : > { %v407_v31 = vpop.f32.mrf.mxu0 }
  0xf5   : > { %v408_v33 = vadd.f32 %v407_v31, %v299_v24  ;;  %v416_v39 = vmax.f32 %v406_v30, 0.0 }
  0xf7   : > { %v417_v37 = vmax.f32 %v408_v33, 0.0 }
  0xf9   : > { %457 = vmatprep.subr.mxu1 %v417_v37 }
  0xfa   : > { %458 = vmatpush1.msra.mxu1 %v416_v39 }
  0xfb   : > { %459 = vmatprep.subr.mxu1 %v415_v41 }
  0xfc   : > { %460 = vmatpush1.msra.mxu1 %v414_v43 }
  0xfd   : > { %461 = vmatprep.subr.mxu1 %v413_v44 }
  0xfe   : > { %462 = vmatpush1.msra.mxu1 %v412_v45 }
  0xff   : > { %463 = vmatprep.subr.mxu1 %v411_v46 }
 0x100   : > { %464 = vmatpush1.msra.mxu1 %v410_v47 }
 0x101   : > { %599 = vmatmul.mubr.msk.f32.vlgmr.msra.gmra.mxu1 %vm429_vm2, %v418_v48 }
 0x1c1   : > { %v499_v56 = vpop.f32.mrf.mxu1 }
 0x1c2   : > { %v500_v59 = vadd.f32 %v499_v56, %v428_v57 }
 0x1c3   : > { %v501_v58 = vpop.f32.mrf.mxu1 }
 0x1c4   : > { %v502_v60 = vadd.f32 %v501_v58, %v428_v57 }
 0x1c6   : > { %v506_v62 = vcombine.low %v500_v59, %v502_v60 }
 0x1c8   : > { %v513_v63 = vrot.slane %v506_v62, %v512_v61 }
 0x1ca   : > { %v520_v0 = vrot.slane %v513_v63, %v512_v61 }
 0x1cc   : > { %526 = vst.msk [vmem:[%s265_s12] sm:$0x3] %vm524_vm3, %v520_v0 }
 0x1cd PF: > { %p14_p9 = scmp.ge.s32.totalorder %s709_s23, 4   ;;  %s781_s20 = smov %s650_s21 }
 0x1ce   : > { %s782_s21 = smov %s718_s26  ;;  %s783_s22 = smov %s709_s23 }
 0x1cf   :  { %16 = sbr.rel (!%p14_p9) target bundleno = 5 (0x5), region = 113 }

</bundles_post_ra>
